<compile_context>
chip_gen: v7x
topology: tpu7x:2x2x1
jax: 0.10.0
libtpu: 0.0.40
codegen_flags: <defaults>
</compile_context>

<pallas_src>
import functools

import jax
import jax.numpy as jnp
from jax.experimental import pallas as pl
from jax.experimental.pallas import tpu as pltpu


def _lovasz_focal_kernel(x_ref, tgt_ref, err_ref, fsum_ref, *,
                         gamma, hw, tp, need_mask):
    # x_ref:   (C, tp) raw logits (one image, one lane tile of pixels)
    # tgt_ref: (1, tp) int32 target class ids
    # err_ref: (C, tp) Lovasz error matrix output
    # fsum_ref:(1, 128) per-tile focal partial sum (broadcast over lanes)
    x = x_ref[...].astype(jnp.float32)

    # inputs.sigmoid() -> values in (0, 1)
    s = jax.nn.sigmoid(x)

    # F.log_softmax(., dim=1) over the channel (sublane) axis.
    # s is bounded in (0, 1) so exp cannot overflow -> max-subtraction skipped.
    lse = jnp.log(jnp.sum(jnp.exp(s), axis=0, keepdims=True))
    ls = s - lse                                           # (C, tp), strictly < 0

    tgt = tgt_ref[...]                                     # (1, tp) int32
    cls = jax.lax.broadcasted_iota(jnp.int32, x.shape, 0)
    onehot = (cls == tgt).astype(jnp.float32)              # (C, tp)

    # Lovasz error matrix: |onehot - ls| == onehot - ls since ls < 0.
    err = onehot - ls

    # FocalLoss2d(gamma, loss_type='sigmoid') on the log-softmax values,
    # evaluated at the target channel only.
    ls_t = jnp.sum(ls * onehot, axis=0, keepdims=True)     # (1, tp)
    p_t = jnp.clip(jax.nn.sigmoid(ls_t), 1e-8, 1.0 - 1e-8)
    one_minus = 1.0 - p_t
    if gamma == 2.0:
        pow_term = one_minus * one_minus                   # (1-p)^2, no exp/log
    else:
        pow_term = jnp.exp(gamma * jnp.log(one_minus))
    focal = -pow_term * jnp.log(p_t)                       # (1, tp)

    if need_mask:
        # Ragged last tile: zero out lanes beyond the real H*W pixels.
        lane = jax.lax.broadcasted_iota(jnp.int32, (1, tp), 1)
        valid = (pl.program_id(1) * tp + lane) < hw
        err = jnp.where(valid, err, 0.0)
        focal = jnp.where(valid, focal, 0.0)

    err_ref[...] = err
    # Per-tile partial sum of the focal term, broadcast across one 128-lane
    # block (lane-dense store); the host reads lane 0 of each block.
    fsum_ref[...] = jnp.broadcast_to(
        jnp.sum(focal, axis=1, keepdims=True), (1, 128))


def _round_up(x, m):
    return ((x + m - 1) // m) * m


def _pick_lane_tile(hw, max_tp, c, min_blocks=1):
    """Lane tile (multiple of 128) covering hw, capped by max_tp and a VMEM
    budget, optionally split so the pixel grid axis has >= min_blocks blocks."""
    hw_pad = _round_up(hw, 128)
    tp = min(hw_pad, max(128, _round_up(max_tp, 128)))
    if min_blocks > 1 and hw_pad > 128:
        # Feed both v7x TensorCores even for single-image calls.
        tp = min(tp, _round_up(pl.cdiv(hw_pad, min_blocks), 128))
    # Double-buffered f32 working set per lane: (C,tp) in + (C,tp) err + (1,tp) tgt.
    bytes_per_lane = 2 * 4 * (2 * c + 1)
    budget = 24 * 1024 * 1024
    tp = min(tp, max(128, (budget // bytes_per_lane) // 128 * 128))
    return tp


def lovasz_focal2_loss(inputs, targets, *, focal_weight=0.5, lovasz_weight=0.5,
                       gamma=2.0, max_tp=16384):
    """inputs: (B, C, H, W) float logits; targets: (B, H, W) int class ids."""
    B, C, H, W = inputs.shape
    HW = H * W
    P = B * HW

    min_blocks = 2 if B == 1 else 1
    tp = _pick_lane_tile(HW, max_tp, C, min_blocks)
    n_i = pl.cdiv(HW, tp)
    HW_pad = n_i * tp
    P_pad = B * HW_pad
    need_mask = HW_pad != HW

    # Native layout, no transpose: (B, C, H, W) -> (B, C, HW) is free.
    x = inputs.reshape(B, C, HW)
    tgt_img = targets.reshape(B, HW).astype(jnp.int32)
    if need_mask:
        # Pad targets with an out-of-range class id -> fg == 0 at padded pixels.
        tgt_img = jnp.pad(tgt_img, ((0, 0), (0, HW_pad - HW)), constant_values=C)
    tgt = tgt_img.reshape(1, P_pad)

    kern = functools.partial(_lovasz_focal_kernel, gamma=float(gamma),
                             hw=HW, tp=tp, need_mask=need_mask)
    n_tiles = B * n_i

    err, fsum = pl.pallas_call(
        kern,
        out_shape=(
            jax.ShapeDtypeStruct((C, P_pad), jnp.float32),      # onehot - log_softmax
            jax.ShapeDtypeStruct((1, n_tiles * 128), jnp.float32),  # focal partials
        ),
        grid_spec=pltpu.PrefetchScalarGridSpec(
            num_scalar_prefetch=0,
            grid=(B, n_i),
            in_specs=[
                # (1, C, tp) block of the native (B, C, HW) tensor; batch dim
                # squeezed so the kernel sees (C, tp).
                pl.BlockSpec((None, C, tp), lambda b, i: (b, 0, i)),
                pl.BlockSpec((1, tp), lambda b, i: (0, b * n_i + i)),
            ],
            out_specs=[
                pl.BlockSpec((C, tp), lambda b, i: (0, b * n_i + i)),
                pl.BlockSpec((1, 128), lambda b, i: (0, b * n_i + i)),
            ],
        ),
        compiler_params=pltpu.CompilerParams(
            # All output blocks are disjoint per grid step -> both axes shard
            # across v7x TensorCores (no-op on single-TC v5e/v6e).
            dimension_semantics=("parallel", "parallel"),
            vmem_limit_bytes=32 * 1024 * 1024,
        ),
    )(x, tgt)

    # ---- focal loss: sum of per-tile partial sums / true pixel count ----
    focal_loss = jnp.sum(fsum.reshape(n_tiles, 128)[:, 0]) / float(P)

    # ---- Lovasz-softmax (per_image=False, classes='present', ignore=None) ----
    # TODO(synk): per-class descending sort + cumsum has no clean Pallas/TPU
    # equivalent; this tail runs in plain JAX (fused XLA key/value sort).
    tgt_vals = jnp.broadcast_to(tgt.astype(jnp.int16), err.shape)   # (C, P_pad)
    neg_err_sorted, tgt_sorted = jax.lax.sort((-err, tgt_vals),
                                              dimension=1, num_keys=1)
    err_sorted = -neg_err_sorted                           # descending per class
    cls_ids = jnp.arange(C, dtype=jnp.int16)[:, None]
    fg_sorted = (tgt_sorted == cls_ids).astype(jnp.float32)
    gts = jnp.sum(fg_sorted, axis=1, keepdims=True)        # (C, 1) pixel counts
    intersection = gts - jnp.cumsum(fg_sorted, axis=1)
    union = gts + jnp.cumsum(1.0 - fg_sorted, axis=1)
    jaccard = 1.0 - intersection / union
    grad = jnp.concatenate(
        [jaccard[:, :1], jaccard[:, 1:] - jaccard[:, :-1]], axis=1)
    per_class = jnp.sum(err_sorted * grad, axis=1)          # (C,)
    present = (gts[:, 0] > 0).astype(jnp.float32)
    lovasz = jnp.sum(per_class * present) / jnp.maximum(jnp.sum(present), 1.0)

    return focal_weight * focal_loss + lovasz_weight * lovasz


if __name__ == "__main__":
    key = jax.random.PRNGKey(0)
    k_x, k_t = jax.random.split(key)

    B, C, H, W = 2, 4, 16, 16
    inputs = jax.random.normal(k_x, (B, C, H, W), dtype=jnp.float32)
    targets = jax.random.randint(k_t, (B, H, W), 0, C, dtype=jnp.int32)

    loss = jax.jit(lovasz_focal2_loss)(inputs, targets)
    jax.block_until_ready(loss)
    assert bool(jnp.isfinite(loss))
    print("KERNEL_OK")
</pallas_src>

<mosaic_0001>
module attributes {stable_mosaic.version = 11 : i64} {
  func.func @_lovasz_focal_kernel(%arg0: i32, %arg1: i32, %arg2: memref<1x4x256xf32, #tpu.memory_space<vmem>>, %arg3: memref<1x256xi32, #tpu.memory_space<vmem>>, %arg4: memref<4x256xf32, #tpu.memory_space<vmem>>, %arg5: memref<1x128xf32, #tpu.memory_space<vmem>>) attributes {dimension_semantics = [#tpu.dimension_semantics<parallel>, #tpu.dimension_semantics<parallel>], iteration_bounds = array<i64: 2, 1>, scalar_prefetch = 0 : i64, scratch_operands = 0 : i64, tpu.core_type = #tpu.core_type<tc>, window_params = [{transform_indices = @transform_0, window_bounds = array<i64: 1, 4, 256>}, {transform_indices = @transform_1, window_bounds = array<i64: 1, 256>}, {transform_indices = @transform_2, window_bounds = array<i64: 4, 256>}, {transform_indices = @transform_3, window_bounds = array<i64: 1, 128>}]} {
    %c0 = arith.constant 0 : index
    %c0_0 = arith.constant 0 : index
    %c0_1 = arith.constant 0 : index
    %0 = vector.load %arg2[%c0, %c0_0, %c0_1] : memref<1x4x256xf32, #tpu.memory_space<vmem>>, vector<1x4x256xf32>
    %1 = vector.shape_cast %0 : vector<1x4x256xf32> to vector<4x256xf32>
    %2 = arith.negf %1 : vector<4x256xf32>
    %3 = math.exp %2 : vector<4x256xf32>
    %cst = arith.constant 1.000000e+00 : f32
    %4 = vector.broadcast %cst : f32 to vector<4x256xf32>
    %5 = arith.addf %4, %3 : vector<4x256xf32>
    %6 = arith.divf %4, %5 : vector<4x256xf32>
    %7 = math.exp %6 : vector<4x256xf32>
    %cst_2 = arith.constant dense<0.000000e+00> : vector<256xf32>
    %8 = vector.multi_reduction <add>, %7, %cst_2 [0] : vector<4x256xf32> to vector<256xf32>
    %9 = vector.shape_cast %8 : vector<256xf32> to vector<1x256xf32>
    %10 = math.log %9 : vector<1x256xf32>
    %11 = vector.broadcast %10 : vector<1x256xf32> to vector<4x256xf32>
    %12 = arith.subf %6, %11 : vector<4x256xf32>
    %c0_3 = arith.constant 0 : index
    %c0_4 = arith.constant 0 : index
    %13 = vector.load %arg3[%c0_3, %c0_4] : memref<1x256xi32, #tpu.memory_space<vmem>>, vector<1x256xi32>
    %14 = tpu.iota {dimensions = array<i32: 0>} : vector<4x256xi32>
    %15 = vector.broadcast %13 : vector<1x256xi32> to vector<4x256xi32>
    %16 = arith.cmpi eq, %14, %15 : vector<4x256xi32>
    %17 = arith.extui %16 : vector<4x256xi1> to vector<4x256xi32>
    %18 = arith.sitofp %17 : vector<4x256xi32> to vector<4x256xf32>
    %19 = arith.subf %18, %12 : vector<4x256xf32>
    %20 = arith.mulf %12, %18 : vector<4x256xf32>
    %cst_5 = arith.constant dense<0.000000e+00> : vector<256xf32>
    %21 = vector.multi_reduction <add>, %20, %cst_5 [0] : vector<4x256xf32> to vector<256xf32>
    %22 = vector.shape_cast %21 : vector<256xf32> to vector<1x256xf32>
    %23 = arith.negf %22 : vector<1x256xf32>
    %24 = math.exp %23 : vector<1x256xf32>
    %cst_6 = arith.constant 1.000000e+00 : f32
    %25 = vector.broadcast %cst_6 : f32 to vector<1x256xf32>
    %26 = arith.addf %25, %24 : vector<1x256xf32>
    %27 = arith.divf %25, %26 : vector<1x256xf32>
    %cst_7 = arith.constant 9.99999993E-9 : f32
    %cst_8 = arith.constant 1.000000e+00 : f32
    %28 = vector.broadcast %cst_7 : f32 to vector<1x256xf32>
    %29 = arith.maximumf %28, %27 : vector<1x256xf32>
    %30 = vector.broadcast %cst_8 : f32 to vector<1x256xf32>
    %31 = arith.minimumf %30, %29 : vector<1x256xf32>
    %cst_9 = arith.constant 1.000000e+00 : f32
    %32 = vector.broadcast %cst_9 : f32 to vector<1x256xf32>
    %33 = arith.subf %32, %31 : vector<1x256xf32>
    %34 = arith.mulf %33, %33 : vector<1x256xf32>
    %cst_10 = arith.constant 0.000000e+00 : f32
    %35 = vector.broadcast %cst_10 : f32 to vector<1x256xf32>
    %36 = arith.subf %35, %34 : vector<1x256xf32>
    %37 = math.log %31 : vector<1x256xf32>
    %38 = arith.mulf %36, %37 : vector<1x256xf32>
    %c0_11 = arith.constant 0 : index
    %c0_12 = arith.constant 0 : index
    %39 = vector.load %arg4[%c0_11, %c0_12] : memref<4x256xf32, #tpu.memory_space<vmem>>, vector<4x256xf32>
    tpu.vector_store %arg4[%c0_11, %c0_12], %19 {strides = array<i32>} : memref<4x256xf32, #tpu.memory_space<vmem>>, vector<4x256xf32>,
    %cst_13 = arith.constant dense<0.000000e+00> : vector<1xf32>
    %40 = vector.multi_reduction <add>, %38, %cst_13 [1] : vector<1x256xf32> to vector<1xf32>
    %41 = vector.shape_cast %40 : vector<1xf32> to vector<1x1xf32>
    %42 = vector.shape_cast %41 : vector<1x1xf32> to vector<1x1xf32>
    %43 = vector.broadcast %42 : vector<1x1xf32> to vector<1x128xf32>
    %c0_14 = arith.constant 0 : index
    %c0_15 = arith.constant 0 : index
    %44 = vector.load %arg5[%c0_14, %c0_15] : memref<1x128xf32, #tpu.memory_space<vmem>>, vector<1x128xf32>
    tpu.vector_store %arg5[%c0_14, %c0_15], %43 {strides = array<i32>} : memref<1x128xf32, #tpu.memory_space<vmem>>, vector<1x128xf32>,
    return
  }
  func.func @transform_0(%arg0: i32, %arg1: i32) -> (i32, i32, i32) {
    %c0_i32 = arith.constant 0 : i32
    %c0_i32_0 = arith.constant 0 : i32
    return %arg0, %c0_i32, %arg1 : i32, i32, i32
  }
  func.func @transform_1(%arg0: i32, %arg1: i32) -> (i32, i32) {
    %c1_i32 = arith.constant 1 : i32
    %0 = arith.muli %arg0, %c1_i32 : i32
    %1 = arith.addi %0, %arg1 : i32
    %c0_i32 = arith.constant 0 : i32
    %c0_i32_0 = arith.constant 0 : i32
    return %c0_i32, %1 : i32, i32
  }
  func.func @transform_2(%arg0: i32, %arg1: i32) -> (i32, i32) {
    %c1_i32 = arith.constant 1 : i32
    %0 = arith.muli %arg0, %c1_i32 : i32
    %1 = arith.addi %0, %arg1 : i32
    %c0_i32 = arith.constant 0 : i32
    %c0_i32_0 = arith.constant 0 : i32
    return %c0_i32, %1 : i32, i32
  }
  func.func @transform_3(%arg0: i32, %arg1: i32) -> (i32, i32) {
    %c1_i32 = arith.constant 1 : i32
    %0 = arith.muli %arg0, %c1_i32 : i32
    %1 = arith.addi %0, %arg1 : i32
    %c0_i32 = arith.constant 0 : i32
    %c0_i32_0 = arith.constant 0 : i32
    return %c0_i32, %1 : i32, i32
  }
}

</mosaic_0001>

<bundles_post_ra>
// kernel: neg.2
= control target key start
LH: loop header
LB: loop body
LE: loop exit
PB: predicated region body
PF: predicated region fallthrough
CT: control target
= control target key end

     0   :  { %s72_s0 = inlined_call_operand.vmem [shape: f32[4,512], index: 0, kind: input, shape index: {}]   ;;  %s73_s1 = inlined_call_operand.vmem [shape: f32[4,512], index: 1, kind: output, shape index: {}]  }
   0x1   :  { %v2_v0 = vld [vmem:[%s72_s0] sm:$0xf]  ;;  %v32_v1 = vld [vmem:[%s72_s0 + $0x4] sm:$0xf]  ;;  %v34_v2 = vld [vmem:[%s72_s0 + $0x8] sm:$0xf] }
   0x2   :  { %v5_v3 = vxor.u32 2147483648, %v2_v0  ;;  %v12_v4 = vxor.u32 2147483648, %v32_v1  ;;  %v20_v5 = vxor.u32 2147483648, %v34_v2  ;;  %v36_v6 = vld [vmem:[%s72_s0 + $0xc] sm:$0xf] }
   0x3   :  { %v28_v7 = vxor.u32 2147483648, %v36_v6 }
   0x4   :  { %7 = vst [vmem:[%s73_s1] sm:$0xf] %v5_v3  ;;  %33 = vst [vmem:[%s73_s1 + $0x4] sm:$0xf] %v12_v4 }
   0x5   :  { %35 = vst [vmem:[%s73_s1 + $0x8] sm:$0xf] %v20_v5  ;;  %37 = vst [vmem:[%s73_s1 + $0xc] sm:$0xf] %v28_v7 }

// kernel: lovasz_focal2_loss.1
= control target key start
LH: loop header
LB: loop body
LE: loop exit
PB: predicated region body
PF: predicated region fallthrough
CT: control target
= control target key end

     0   :  { %s583_s12 = smov 0   ;;  %s585_s13 = smov 0   ;;  %s639_s0 = inlined_call_operand.vmem [shape: f32[2,4,256], index: 0, kind: input, shape index: {}]   ;;  %s640_s1 = inlined_call_operand.vmem [shape: s32[1,512], index: 1, kind: input, shape index: {}]   ;;  %s641_s2 = inlined_call_operand.vmem [shape: f32[4,512], index: 2, kind: output, shape index: {0}]   ;;  %s642_s3 = inlined_call_operand.vmem [shape: f32[1,256], index: 3, kind: output, shape index: {1}]  }
   0x1   :  { %s587_s14 = smov 0  }
   0x2 LB: > { %s26_s15 = sadd.s32 1, %s556_s13  ;;  %p477_p0 = scmp.ge.s32.totalorder %s560_s14, 1  ;;  %s560_s14 = sphi %s587_s14, %s14_s14   ;;  %s556_s13 = sphi %s585_s13, %s644_s13   ;;  %s552_s12 = sphi %s583_s12, %s643_s12  }
   0x3   : > { %p28_p1 = scmp.ge.s32.totalorder %s26_s15, 2  ;;  %p177_p2 = scmp.lt.s32.totalorder %s560_s14, 3 }
   0x5   : > { %s646_s15 = smov (%p28_p1, %s26_s15), 0  ;;  %p178_p3 = pnand %p477_p0, %p177_p2 }
   0x6   : > { %p216_p4 = scmp.lt.s32.totalorder (!%p178_p3), %s552_s12, 1  ;;  %vm257_vm0 = vcmask (!%p178_p3), 1043456   ;;  %s480_s21 = sshll.u32 (!%p178_p3), %s552_s12, 1  ;;  %v282_v15 = vlaneseq (!%p178_p3)  ;;  %v562_v32 = vmov (!%p178_p3), 0.0  }
   0x7   : > { %181 = sbr.rel (%p178_p3) target bundleno = 297 (0x129), region = 28  ;;  %p227_p5 = scmp.lt.s32.totalorder (!%p178_p3), %s480_s21, 3 }
   0x8   : > { %v283_v20 = vshrl.u32 (!%p178_p3), %v282_v15, 7 }
   0xa   : > { %v286_v24 = vsub.s32 (!%p178_p3), 0, %v283_v20  ;;  %v290_v25 = vsub.s32 (!%p178_p3), 1, %v283_v20 }
   0xe   : > { %s605_s16 = scalar_select %p216_p4, %s552_s12, 1 }
   0xf   : > { %s648_s21 = smov (!%p227_p5, %s480_s21), 3 }
  0x10   : > { %s490_s17 = sshll.u32 %s605_s16, 3  ;;  %s229_s24 = scalar_lea.vmem %s640_s1, %s648_s21 }
  0x11   : > { %s223_s20 = scalar_lea.vmem %s639_s0, %s490_s17  ;;  %v281_v26 = vld [vmem:[%s229_s24] sm:$0x3]  ;;  %s482_s25 = sshll.u32 %s648_s21, 2 }
  0x12   : > { %v245_v0 = vld [vmem:[%s223_s20] sm:$0xff]  ;;  %v287_v27 = vrot.slane %v281_v26, %v286_v24  ;;  %v291_v28 = vrot.slane %v281_v26, %v290_v25  ;;  %s237_s28 = scalar_lea.vmem %s641_s2, %s482_s25  ;;  %s243_s4 = scalar_lea.vmem %s642_s3, %s605_s16 }
  0x13   : > { %v483_v1 = vmul.f32 -1.442695, %v245_v0 }
  0x14   : > { %vm292_vm1 = vcmp.eq.s32.totalorder %v283_v20, %v287_v27  ;;  %vm293_vm2 = vcmp.eq.s32.totalorder %v283_v20, %v291_v28 }
  0x15   : > { %516 = vpow2.f32 %v483_v1  ;;  %v484_v33 = vsel %vm292_vm1, 1.0, %v562_v32  ;;  %v485_v34 = vsel %vm293_vm2, 1.0, %v562_v32 }
  0x16   : > { %v305_v37 = vcombine.low %v484_v33, %v485_v34 }
  0x1f   : > { %v517_v2 = vpop.eup %516 }
  0x20   : > { %v249_v3 = vadd.f32 1.0, %v517_v2 }
  0x22   : > { %518 = vrcp.f32 %v249_v3 }
  0x2c   : > { %v519_v4 = vpop.eup %518 }
  0x2d   : > { %v252_v5 = vmul.f32 1.442695, %v519_v4 }
  0x2f   : > { %520 = vpow2.f32 %v252_v5 }
  0x39   : > { %v521_v6 = vpop.eup %520 }
  0x3a   : > { %v255_v7 = vcombine.high %v521_v6, %v521_v6  ;;  %v258_v8 = vsel %vm257_vm0, %v521_v6, 0.0 }
  0x3b   : > { %v259_v9 = vrot.slane %v258_v8, 4 }
  0x3c   : > { %v265_v10 = vsel %vm257_vm0, %v255_v7, 0.0 }
  0x3d   : > { %v260_v11 = vadd.f32 %v259_v9, %v258_v8  ;;  %v266_v12 = vrot.slane %v265_v10, 4 }
  0x3f   : > { %v261_v13 = vrot.slane %v260_v11, 2  ;;  %v267_v14 = vadd.f32 %v266_v12, %v265_v10 }
  0x41   : > { %v262_v16 = vadd.f32 %v261_v13, %v260_v11  ;;  %v268_v17 = vrot.slane %v267_v14, 2 }
  0x43   : > { %v263_v18 = vrot.slane %v262_v16, 1  ;;  %v269_v19 = vadd.f32 %v268_v17, %v267_v14 }
  0x45   : > { %v264_v21 = vadd.f32 %v263_v18, %v262_v16  ;;  %v270_v22 = vrot.slane %v269_v19, 1 }
  0x47   : > { %v271_v23 = vadd.f32 %v270_v22, %v269_v19  ;;  %522 = vlog2.f32 %v264_v21 }
  0x49   : > { %524 = vlog2.f32 %v271_v23 }
  0x51   : > { %v523_v29 = vpop.eup %522 }
  0x52   : > { %v273_v30 = vmul.f32 0.6931472, %v523_v29 }
  0x53   : > { %v525_v31 = vpop.eup %524 }
  0x54   : > { %v275_v35 = vmul.f32 0.6931472, %v525_v31 }
  0x56   : > { %v278_v36 = vcombine.low %v273_v30, %v275_v35 }
  0x58   : > { %v280_v38 = vsub.f32 %v519_v4, %v278_v36 }
  0x5a   : > { %v299_v39 = vcombine.high %v280_v38, %v280_v38  ;;  %v301_v40 = vsub.f32 %v484_v33, %v280_v38  ;;  %v307_v41 = vmul.f32 %v305_v37, %v280_v38 }
  0x5c   : > { %v302_v42 = vsub.f32 %v485_v34, %v299_v39  ;;  %v309_v43 = vcombine.high %v307_v41, %v307_v41  ;;  %v311_v44 = vsel %vm257_vm0, %v307_v41, 0.0 }
  0x5d   : > { %v312_v45 = vrot.slane %v311_v44, 4 }
  0x5e   : > { %v318_v46 = vsel %vm257_vm0, %v309_v43, 0.0  ;;  %v355_v47 = vcombine.low %v301_v40, %v302_v42 }
  0x5f   : > { %v313_v48 = vadd.f32 %v312_v45, %v311_v44  ;;  %v319_v49 = vrot.slane %v318_v46, 4 }
  0x60   : > { %357 = vst [vmem:[%s237_s28] sm:$0xff] %v355_v47 }
  0x61   : > { %v314_v50 = vrot.slane %v313_v48, 2  ;;  %v320_v51 = vadd.f32 %v319_v49, %v318_v46 }
  0x63   : > { %v315_v52 = vadd.f32 %v314_v50, %v313_v48  ;;  %v321_v53 = vrot.slane %v320_v51, 2 }
  0x65   : > { %v316_v54 = vrot.slane %v315_v52, 1  ;;  %v322_v55 = vadd.f32 %v321_v53, %v320_v51 }
  0x67   : > { %v317_v56 = vadd.f32 %v316_v54, %v315_v52  ;;  %v323_v57 = vrot.slane %v322_v55, 1 }
  0x69   : > { %v324_v58 = vadd.f32 %v323_v57, %v322_v55  ;;  %v486_v59 = vmul.f32 -1.442695, %v317_v56 }
  0x6b   : > { %526 = vpow2.f32 %v486_v59  ;;  %v487_v60 = vmul.f32 -1.442695, %v324_v58 }
  0x6d   : > { %528 = vpow2.f32 %v487_v60 }
  0x75   : > { %v527_v61 = vpop.eup %526 }
  0x76   : > { %v331_v62 = vadd.f32 1.0, %v527_v61 }
  0x77   : > { %v529_v63 = vpop.eup %528 }
  0x78   : > { %v332_v0 = vadd.f32 1.0, %v529_v63  ;;  %530 = vrcp.f32 %v331_v62 }
  0x7a   : > { %532 = vrcp.f32 %v332_v0 }
  0x82   : > { %v531_v1 = vpop.eup %530 }
  0x83   : > { %v337_v2 = vmax.f32 %v531_v1, 1e-08 }
  0x84   : > { %v533_v3 = vpop.eup %532 }
  0x85   : > { %v338_v4 = vmax.f32 %v533_v3, 1e-08  ;;  %v339_v5 = vmin.f32 %v337_v2, 1.0 }
  0x87   : > { %v340_v6 = vmin.f32 %v338_v4, 1.0  ;;  %534 = vlog2.f32 %v339_v5  ;;  %v341_v7 = vsub.f32 1.0, %v339_v5 }
  0x89   : > { %536 = vlog2.f32 %v340_v6  ;;  %v342_v8 = vsub.f32 1.0, %v340_v6  ;;  %v343_v9 = vmul.f32 %v341_v7, %v341_v7 }
  0x8b   : > { %v344_v10 = vmul.f32 %v342_v8, %v342_v8  ;;  %v345_v11 = vsub.f32 0.0, %v343_v9 }
  0x8d   : > { %v346_v13 = vsub.f32 0.0, %v344_v10 }
  0x91   : > { %v535_v12 = vpop.eup %534 }
  0x92   : > { %v348_v14 = vmul.f32 0.6931472, %v535_v12 }
  0x93   : > { %v537_v15 = vpop.eup %536 }
  0x94   : > { %v350_v16 = vmul.f32 0.6931472, %v537_v15  ;;  %v351_v17 = vmul.f32 %v348_v14, %v345_v11 }
  0x96   : > { %v352_v18 = vmul.f32 %v350_v16, %v346_v13 }
  0x98   : > { %v358_v19 = vadd.f32 %v352_v18, %v351_v17 }
  0x9a   : > { %359 = vadd.xlane.f32.xlu0 %v358_v19 }
 0x127   : > { %v360_v20 = vpop.xlane.xlu0 %359 }
 0x128   : > { %361 = vst [vmem:[%s243_s4] sm:$0x1] %v360_v20 }
 0x129 PF: > { %s14_s14 = sadd.s32 1, %s560_s14   ;;  %s643_s12 = smov %s556_s13 }
 0x12a   : > { %p11_p6 = scmp.ge.s32.totalorder %s14_s14, 4   ;;  %s644_s13 = smov %s646_s15 }
 0x12c   :  { %13 = sbr.rel (!%p11_p6) target bundleno = 2 (0x2), region = 73 }

</bundles_post_ra>
